<compile_context>
chip_gen: v5e
topology: v5e:2x2
jax: 0.10.0
libtpu: 0.0.40
codegen_flags: <defaults>
</compile_context>

<pallas_src>
import jax
import jax.numpy as jnp
from jax.experimental import pallas as pl
from jax.experimental.pallas import tpu as pltpu

# Small, deterministic hyperparameters consistent with ByteEncoder.__init__.
NUM_HEADS = 8            # 4 pc byte-groups + 4 address byte-groups
VOCAB = 256              # vocab_sizes_pc[i] == vocab_sizes_address[i]
EMBED = 8                # embedding_size
CONTEXT = 4              # context_size
EC = EMBED * CONTEXT     # embedding row width == Linear-1 input dim
HIDDEN = 32              # hidden_size


def byte_encoder_kernel(e_ref,       # VMEM (NUM_HEADS, EC)        gathered embedding rows
                        w1_ref,      # VMEM (NUM_HEADS, EC, HIDDEN)
                        b1_ref,      # VMEM (NUM_HEADS, HIDDEN)
                        w2_ref,      # VMEM (NUM_HEADS, HIDDEN, VOCAB)
                        b2_ref,      # VMEM (NUM_HEADS, VOCAB)
                        out_ref):    # VMEM (NUM_HEADS, VOCAB)     log-probs, all heads
    rows = []
    # Static unroll over the 8 heads: ~150 KFLOPs total, MXU slot has huge slack.
    for h in range(NUM_HEADS):
        e = e_ref[pl.ds(h, 1), :]                                      # (1, EC)

        # Linear 1 + ReLU (MXU matmul, f32 accumulate).
        h1 = jnp.dot(e, w1_ref[h],
                     preferred_element_type=jnp.float32) + b1_ref[pl.ds(h, 1), :]
        h1 = jnp.maximum(h1, 0.0)                                      # (1, HIDDEN)

        # Linear 2 + ReLU (ReLU before log_softmax mirrors the PyTorch module).
        h2 = jnp.dot(h1, w2_ref[h],
                     preferred_element_type=jnp.float32) + b2_ref[pl.ds(h, 1), :]
        h2 = jnp.maximum(h2, 0.0)                                      # (1, VOCAB)
        rows.append(h2)

    logits = jnp.concatenate(rows, axis=0)                             # (8, VOCAB)

    # log_softmax over dim=-1, numerically stable, computed on the full slab
    # so the final store is one unmasked lane-dense (8, 256) write.
    m = jnp.max(logits, axis=-1, keepdims=True)
    s = logits - m
    lse = jnp.log(jnp.sum(jnp.exp(s), axis=-1, keepdims=True))
    out_ref[...] = s - lse


def byte_encoder_forward(indices, emb, w1, b1, w2, b2):
    """indices: (8,) int32 -> (8, VOCAB) log-probs (pc heads 0-3, address heads 4-7)."""
    # Clamp untrusted indices (VMEM has no bounds check; XLA gather clamps anyway).
    indices = jnp.clip(indices.astype(jnp.int32), 0, VOCAB - 1)

    # Gather only the 8 needed embedding rows; the kernel never sees the full
    # (8, 256, EC) tables, cutting HBM traffic roughly in half.
    e = emb[jnp.arange(NUM_HEADS), indices]                            # (8, EC)

    vmem = pl.BlockSpec(memory_space=pltpu.MemorySpace.VMEM)
    out = pl.pallas_call(
        byte_encoder_kernel,
        out_shape=jax.ShapeDtypeStruct((NUM_HEADS, VOCAB), jnp.float32),
        in_specs=[vmem, vmem, vmem, vmem, vmem],
        out_specs=vmem,
    )(e, w1, b1, w2, b2)
    return out


def reference_forward(indices, emb, w1, b1, w2, b2):
    """Pure-JAX reference mirroring the PyTorch forward."""
    indices = jnp.clip(indices.astype(jnp.int32), 0, VOCAB - 1)
    e = emb[jnp.arange(NUM_HEADS), indices]                            # (8, EC)
    h1 = jnp.maximum(jnp.einsum('he,heo->ho', e, w1) + b1, 0.0)
    h2 = jnp.maximum(jnp.einsum('hd,hdo->ho', h1, w2) + b2, 0.0)
    return jax.nn.log_softmax(h2, axis=-1)


def init_params(key):
    """Deterministic synthetic params (PyTorch-style, Linear weights pre-transposed)."""
    k_emb, k_w1, k_b1, k_w2, k_b2 = jax.random.split(key, 5)
    emb = jax.random.normal(k_emb, (NUM_HEADS, VOCAB, EC), jnp.float32)
    lim1 = 1.0 / (EC ** 0.5)
    w1 = jax.random.uniform(k_w1, (NUM_HEADS, EC, HIDDEN), jnp.float32, -lim1, lim1)
    b1 = jax.random.uniform(k_b1, (NUM_HEADS, HIDDEN), jnp.float32, -lim1, lim1)
    lim2 = 1.0 / (HIDDEN ** 0.5)
    w2 = jax.random.uniform(k_w2, (NUM_HEADS, HIDDEN, VOCAB), jnp.float32, -lim2, lim2)
    b2 = jax.random.uniform(k_b2, (NUM_HEADS, VOCAB), jnp.float32, -lim2, lim2)
    return emb, w1, b1, w2, b2


if __name__ == "__main__":
    key = jax.random.PRNGKey(0)
    emb, w1, b1, w2, b2 = init_params(key)

    # Integer vocab indices that the PyTorch forward would produce from the
    # token.*_ixs dict lookups (heads 0-3 = pc bytes, 4-7 = address bytes).
    indices = jax.random.randint(jax.random.PRNGKey(1), (NUM_HEADS,), 0, VOCAB,
                                 dtype=jnp.int32)

    log_probs = byte_encoder_forward(indices, emb, w1, b1, w2, b2)
    log_probs = jax.block_until_ready(log_probs)

    ref = reference_forward(indices, emb, w1, b1, w2, b2)
    assert log_probs.shape == (NUM_HEADS, VOCAB)
    assert jnp.allclose(log_probs, ref, rtol=1e-3, atol=1e-3), "mismatch vs reference"

    print("KERNEL_OK")
</pallas_src>

<mosaic_0001>
module attributes {stable_mosaic.version = 11 : i64} {
  func.func @byte_encoder_kernel(%arg0: memref<8x32xf32, #tpu.memory_space<vmem>>, %arg1: memref<8x32x32xf32, #tpu.memory_space<vmem>>, %arg2: memref<8x32xf32, #tpu.memory_space<vmem>>, %arg3: memref<8x32x256xf32, #tpu.memory_space<vmem>>, %arg4: memref<8x256xf32, #tpu.memory_space<vmem>>, %arg5: memref<8x256xf32, #tpu.memory_space<vmem>>) attributes {dimension_semantics = [], scalar_prefetch = 0 : i64, scratch_operands = 0 : i64, tpu.core_type = #tpu.core_type<tc>} {
    %c0 = arith.constant 0 : index
    %c0_0 = arith.constant 0 : index
    %0 = vector.load %arg0[%c0, %c0_0] : memref<8x32xf32, #tpu.memory_space<vmem>>, vector<1x32xf32>
    %c0_1 = arith.constant 0 : index
    %c0_2 = arith.constant 0 : index
    %c0_3 = arith.constant 0 : index
    %1 = vector.load %arg1[%c0_1, %c0_2, %c0_3] : memref<8x32x32xf32, #tpu.memory_space<vmem>>, vector<1x32x32xf32>
    %2 = vector.shape_cast %1 : vector<1x32x32xf32> to vector<32x32xf32>
    %cst = arith.constant dense<0.000000e+00> : vector<1x32xf32>
    %3 = tpu.matmul %0, %2, %cst {dimension_numbers = #tpu.dot_dimension_numbers<[1], [0], [0], [1], [0, 0, 1, 1], [], []>} : vector<1x32xf32>, vector<32x32xf32>, vector<1x32xf32> -> vector<1x32xf32>
    %c0_4 = arith.constant 0 : index
    %c0_5 = arith.constant 0 : index
    %4 = vector.load %arg2[%c0_4, %c0_5] : memref<8x32xf32, #tpu.memory_space<vmem>>, vector<1x32xf32>
    %5 = arith.addf %3, %4 : vector<1x32xf32>
    %cst_6 = arith.constant 0.000000e+00 : f32
    %6 = vector.broadcast %cst_6 : f32 to vector<1x32xf32>
    %7 = arith.maximumf %5, %6 : vector<1x32xf32>
    %c0_7 = arith.constant 0 : index
    %c0_8 = arith.constant 0 : index
    %c0_9 = arith.constant 0 : index
    %8 = vector.load %arg3[%c0_7, %c0_8, %c0_9] : memref<8x32x256xf32, #tpu.memory_space<vmem>>, vector<1x32x256xf32>
    %9 = vector.shape_cast %8 : vector<1x32x256xf32> to vector<32x256xf32>
    %cst_10 = arith.constant dense<0.000000e+00> : vector<1x256xf32>
    %10 = tpu.matmul %7, %9, %cst_10 {dimension_numbers = #tpu.dot_dimension_numbers<[1], [0], [0], [1], [0, 0, 1, 1], [], []>} : vector<1x32xf32>, vector<32x256xf32>, vector<1x256xf32> -> vector<1x256xf32>
    %c0_11 = arith.constant 0 : index
    %c0_12 = arith.constant 0 : index
    %11 = vector.load %arg4[%c0_11, %c0_12] : memref<8x256xf32, #tpu.memory_space<vmem>>, vector<1x256xf32>
    %12 = arith.addf %10, %11 : vector<1x256xf32>
    %cst_13 = arith.constant 0.000000e+00 : f32
    %13 = vector.broadcast %cst_13 : f32 to vector<1x256xf32>
    %14 = arith.maximumf %12, %13 : vector<1x256xf32>
    %c1 = arith.constant 1 : index
    %c0_14 = arith.constant 0 : index
    %15 = vector.load %arg0[%c1, %c0_14] : memref<8x32xf32, #tpu.memory_space<vmem>>, vector<1x32xf32>
    %c1_15 = arith.constant 1 : index
    %c0_16 = arith.constant 0 : index
    %c0_17 = arith.constant 0 : index
    %16 = vector.load %arg1[%c1_15, %c0_16, %c0_17] : memref<8x32x32xf32, #tpu.memory_space<vmem>>, vector<1x32x32xf32>
    %17 = vector.shape_cast %16 : vector<1x32x32xf32> to vector<32x32xf32>
    %cst_18 = arith.constant dense<0.000000e+00> : vector<1x32xf32>
    %18 = tpu.matmul %15, %17, %cst_18 {dimension_numbers = #tpu.dot_dimension_numbers<[1], [0], [0], [1], [0, 0, 1, 1], [], []>} : vector<1x32xf32>, vector<32x32xf32>, vector<1x32xf32> -> vector<1x32xf32>
    %c1_19 = arith.constant 1 : index
    %c0_20 = arith.constant 0 : index
    %19 = vector.load %arg2[%c1_19, %c0_20] : memref<8x32xf32, #tpu.memory_space<vmem>>, vector<1x32xf32>
    %20 = arith.addf %18, %19 : vector<1x32xf32>
    %cst_21 = arith.constant 0.000000e+00 : f32
    %21 = vector.broadcast %cst_21 : f32 to vector<1x32xf32>
    %22 = arith.maximumf %20, %21 : vector<1x32xf32>
    %c1_22 = arith.constant 1 : index
    %c0_23 = arith.constant 0 : index
    %c0_24 = arith.constant 0 : index
    %23 = vector.load %arg3[%c1_22, %c0_23, %c0_24] : memref<8x32x256xf32, #tpu.memory_space<vmem>>, vector<1x32x256xf32>
    %24 = vector.shape_cast %23 : vector<1x32x256xf32> to vector<32x256xf32>
    %cst_25 = arith.constant dense<0.000000e+00> : vector<1x256xf32>
    %25 = tpu.matmul %22, %24, %cst_25 {dimension_numbers = #tpu.dot_dimension_numbers<[1], [0], [0], [1], [0, 0, 1, 1], [], []>} : vector<1x32xf32>, vector<32x256xf32>, vector<1x256xf32> -> vector<1x256xf32>
    %c1_26 = arith.constant 1 : index
    %c0_27 = arith.constant 0 : index
    %26 = vector.load %arg4[%c1_26, %c0_27] : memref<8x256xf32, #tpu.memory_space<vmem>>, vector<1x256xf32>
    %27 = arith.addf %25, %26 : vector<1x256xf32>
    %cst_28 = arith.constant 0.000000e+00 : f32
    %28 = vector.broadcast %cst_28 : f32 to vector<1x256xf32>
    %29 = arith.maximumf %27, %28 : vector<1x256xf32>
    %c2 = arith.constant 2 : index
    %c0_29 = arith.constant 0 : index
    %30 = vector.load %arg0[%c2, %c0_29] : memref<8x32xf32, #tpu.memory_space<vmem>>, vector<1x32xf32>
    %c2_30 = arith.constant 2 : index
    %c0_31 = arith.constant 0 : index
    %c0_32 = arith.constant 0 : index
    %31 = vector.load %arg1[%c2_30, %c0_31, %c0_32] : memref<8x32x32xf32, #tpu.memory_space<vmem>>, vector<1x32x32xf32>
    %32 = vector.shape_cast %31 : vector<1x32x32xf32> to vector<32x32xf32>
    %cst_33 = arith.constant dense<0.000000e+00> : vector<1x32xf32>
    %33 = tpu.matmul %30, %32, %cst_33 {dimension_numbers = #tpu.dot_dimension_numbers<[1], [0], [0], [1], [0, 0, 1, 1], [], []>} : vector<1x32xf32>, vector<32x32xf32>, vector<1x32xf32> -> vector<1x32xf32>
    %c2_34 = arith.constant 2 : index
    %c0_35 = arith.constant 0 : index
    %34 = vector.load %arg2[%c2_34, %c0_35] : memref<8x32xf32, #tpu.memory_space<vmem>>, vector<1x32xf32>
    %35 = arith.addf %33, %34 : vector<1x32xf32>
    %cst_36 = arith.constant 0.000000e+00 : f32
    %36 = vector.broadcast %cst_36 : f32 to vector<1x32xf32>
    %37 = arith.maximumf %35, %36 : vector<1x32xf32>
    %c2_37 = arith.constant 2 : index
    %c0_38 = arith.constant 0 : index
    %c0_39 = arith.constant 0 : index
    %38 = vector.load %arg3[%c2_37, %c0_38, %c0_39] : memref<8x32x256xf32, #tpu.memory_space<vmem>>, vector<1x32x256xf32>
    %39 = vector.shape_cast %38 : vector<1x32x256xf32> to vector<32x256xf32>
    %cst_40 = arith.constant dense<0.000000e+00> : vector<1x256xf32>
    %40 = tpu.matmul %37, %39, %cst_40 {dimension_numbers = #tpu.dot_dimension_numbers<[1], [0], [0], [1], [0, 0, 1, 1], [], []>} : vector<1x32xf32>, vector<32x256xf32>, vector<1x256xf32> -> vector<1x256xf32>
    %c2_41 = arith.constant 2 : index
    %c0_42 = arith.constant 0 : index
    %41 = vector.load %arg4[%c2_41, %c0_42] : memref<8x256xf32, #tpu.memory_space<vmem>>, vector<1x256xf32>
    %42 = arith.addf %40, %41 : vector<1x256xf32>
    %cst_43 = arith.constant 0.000000e+00 : f32
    %43 = vector.broadcast %cst_43 : f32 to vector<1x256xf32>
    %44 = arith.maximumf %42, %43 : vector<1x256xf32>
    %c3 = arith.constant 3 : index
    %c0_44 = arith.constant 0 : index
    %45 = vector.load %arg0[%c3, %c0_44] : memref<8x32xf32, #tpu.memory_space<vmem>>, vector<1x32xf32>
    %c3_45 = arith.constant 3 : index
    %c0_46 = arith.constant 0 : index
    %c0_47 = arith.constant 0 : index
    %46 = vector.load %arg1[%c3_45, %c0_46, %c0_47] : memref<8x32x32xf32, #tpu.memory_space<vmem>>, vector<1x32x32xf32>
    %47 = vector.shape_cast %46 : vector<1x32x32xf32> to vector<32x32xf32>
    %cst_48 = arith.constant dense<0.000000e+00> : vector<1x32xf32>
    %48 = tpu.matmul %45, %47, %cst_48 {dimension_numbers = #tpu.dot_dimension_numbers<[1], [0], [0], [1], [0, 0, 1, 1], [], []>} : vector<1x32xf32>, vector<32x32xf32>, vector<1x32xf32> -> vector<1x32xf32>
    %c3_49 = arith.constant 3 : index
    %c0_50 = arith.constant 0 : index
    %49 = vector.load %arg2[%c3_49, %c0_50] : memref<8x32xf32, #tpu.memory_space<vmem>>, vector<1x32xf32>
    %50 = arith.addf %48, %49 : vector<1x32xf32>
    %cst_51 = arith.constant 0.000000e+00 : f32
    %51 = vector.broadcast %cst_51 : f32 to vector<1x32xf32>
    %52 = arith.maximumf %50, %51 : vector<1x32xf32>
    %c3_52 = arith.constant 3 : index
    %c0_53 = arith.constant 0 : index
    %c0_54 = arith.constant 0 : index
    %53 = vector.load %arg3[%c3_52, %c0_53, %c0_54] : memref<8x32x256xf32, #tpu.memory_space<vmem>>, vector<1x32x256xf32>
    %54 = vector.shape_cast %53 : vector<1x32x256xf32> to vector<32x256xf32>
    %cst_55 = arith.constant dense<0.000000e+00> : vector<1x256xf32>
    %55 = tpu.matmul %52, %54, %cst_55 {dimension_numbers = #tpu.dot_dimension_numbers<[1], [0], [0], [1], [0, 0, 1, 1], [], []>} : vector<1x32xf32>, vector<32x256xf32>, vector<1x256xf32> -> vector<1x256xf32>
    %c3_56 = arith.constant 3 : index
    %c0_57 = arith.constant 0 : index
    %56 = vector.load %arg4[%c3_56, %c0_57] : memref<8x256xf32, #tpu.memory_space<vmem>>, vector<1x256xf32>
    %57 = arith.addf %55, %56 : vector<1x256xf32>
    %cst_58 = arith.constant 0.000000e+00 : f32
    %58 = vector.broadcast %cst_58 : f32 to vector<1x256xf32>
    %59 = arith.maximumf %57, %58 : vector<1x256xf32>
    %c4 = arith.constant 4 : index
    %c0_59 = arith.constant 0 : index
    %60 = vector.load %arg0[%c4, %c0_59] : memref<8x32xf32, #tpu.memory_space<vmem>>, vector<1x32xf32>
    %c4_60 = arith.constant 4 : index
    %c0_61 = arith.constant 0 : index
    %c0_62 = arith.constant 0 : index
    %61 = vector.load %arg1[%c4_60, %c0_61, %c0_62] : memref<8x32x32xf32, #tpu.memory_space<vmem>>, vector<1x32x32xf32>
    %62 = vector.shape_cast %61 : vector<1x32x32xf32> to vector<32x32xf32>
    %cst_63 = arith.constant dense<0.000000e+00> : vector<1x32xf32>
    %63 = tpu.matmul %60, %62, %cst_63 {dimension_numbers = #tpu.dot_dimension_numbers<[1], [0], [0], [1], [0, 0, 1, 1], [], []>} : vector<1x32xf32>, vector<32x32xf32>, vector<1x32xf32> -> vector<1x32xf32>
    %c4_64 = arith.constant 4 : index
    %c0_65 = arith.constant 0 : index
    %64 = vector.load %arg2[%c4_64, %c0_65] : memref<8x32xf32, #tpu.memory_space<vmem>>, vector<1x32xf32>
    %65 = arith.addf %63, %64 : vector<1x32xf32>
    %cst_66 = arith.constant 0.000000e+00 : f32
    %66 = vector.broadcast %cst_66 : f32 to vector<1x32xf32>
    %67 = arith.maximumf %65, %66 : vector<1x32xf32>
    %c4_67 = arith.constant 4 : index
    %c0_68 = arith.constant 0 : index
    %c0_69 = arith.constant 0 : index
    %68 = vector.load %arg3[%c4_67, %c0_68, %c0_69] : memref<8x32x256xf32, #tpu.memory_space<vmem>>, vector<1x32x256xf32>
    %69 = vector.shape_cast %68 : vector<1x32x256xf32> to vector<32x256xf32>
    %cst_70 = arith.constant dense<0.000000e+00> : vector<1x256xf32>
    %70 = tpu.matmul %67, %69, %cst_70 {dimension_numbers = #tpu.dot_dimension_numbers<[1], [0], [0], [1], [0, 0, 1, 1], [], []>} : vector<1x32xf32>, vector<32x256xf32>, vector<1x256xf32> -> vector<1x256xf32>
    %c4_71 = arith.constant 4 : index
    %c0_72 = arith.constant 0 : index
    %71 = vector.load %arg4[%c4_71, %c0_72] : memref<8x256xf32, #tpu.memory_space<vmem>>, vector<1x256xf32>
    %72 = arith.addf %70, %71 : vector<1x256xf32>
    %cst_73 = arith.constant 0.000000e+00 : f32
    %73 = vector.broadcast %cst_73 : f32 to vector<1x256xf32>
    %74 = arith.maximumf %72, %73 : vector<1x256xf32>
    %c5 = arith.constant 5 : index
    %c0_74 = arith.constant 0 : index
    %75 = vector.load %arg0[%c5, %c0_74] : memref<8x32xf32, #tpu.memory_space<vmem>>, vector<1x32xf32>
    %c5_75 = arith.constant 5 : index
    %c0_76 = arith.constant 0 : index
    %c0_77 = arith.constant 0 : index
    %76 = vector.load %arg1[%c5_75, %c0_76, %c0_77] : memref<8x32x32xf32, #tpu.memory_space<vmem>>, vector<1x32x32xf32>
    %77 = vector.shape_cast %76 : vector<1x32x32xf32> to vector<32x32xf32>
    %cst_78 = arith.constant dense<0.000000e+00> : vector<1x32xf32>
    %78 = tpu.matmul %75, %77, %cst_78 {dimension_numbers = #tpu.dot_dimension_numbers<[1], [0], [0], [1], [0, 0, 1, 1], [], []>} : vector<1x32xf32>, vector<32x32xf32>, vector<1x32xf32> -> vector<1x32xf32>
    %c5_79 = arith.constant 5 : index
    %c0_80 = arith.constant 0 : index
    %79 = vector.load %arg2[%c5_79, %c0_80] : memref<8x32xf32, #tpu.memory_space<vmem>>, vector<1x32xf32>
    %80 = arith.addf %78, %79 : vector<1x32xf32>
    %cst_81 = arith.constant 0.000000e+00 : f32
    %81 = vector.broadcast %cst_81 : f32 to vector<1x32xf32>
    %82 = arith.maximumf %80, %81 : vector<1x32xf32>
    %c5_82 = arith.constant 5 : index
    %c0_83 = arith.constant 0 : index
    %c0_84 = arith.constant 0 : index
    %83 = vector.load %arg3[%c5_82, %c0_83, %c0_84] : memref<8x32x256xf32, #tpu.memory_space<vmem>>, vector<1x32x256xf32>
    %84 = vector.shape_cast %83 : vector<1x32x256xf32> to vector<32x256xf32>
    %cst_85 = arith.constant dense<0.000000e+00> : vector<1x256xf32>
    %85 = tpu.matmul %82, %84, %cst_85 {dimension_numbers = #tpu.dot_dimension_numbers<[1], [0], [0], [1], [0, 0, 1, 1], [], []>} : vector<1x32xf32>, vector<32x256xf32>, vector<1x256xf32> -> vector<1x256xf32>
    %c5_86 = arith.constant 5 : index
    %c0_87 = arith.constant 0 : index
    %86 = vector.load %arg4[%c5_86, %c0_87] : memref<8x256xf32, #tpu.memory_space<vmem>>, vector<1x256xf32>
    %87 = arith.addf %85, %86 : vector<1x256xf32>
    %cst_88 = arith.constant 0.000000e+00 : f32
    %88 = vector.broadcast %cst_88 : f32 to vector<1x256xf32>
    %89 = arith.maximumf %87, %88 : vector<1x256xf32>
    %c6 = arith.constant 6 : index
    %c0_89 = arith.constant 0 : index
    %90 = vector.load %arg0[%c6, %c0_89] : memref<8x32xf32, #tpu.memory_space<vmem>>, vector<1x32xf32>
    %c6_90 = arith.constant 6 : index
    %c0_91 = arith.constant 0 : index
    %c0_92 = arith.constant 0 : index
    %91 = vector.load %arg1[%c6_90, %c0_91, %c0_92] : memref<8x32x32xf32, #tpu.memory_space<vmem>>, vector<1x32x32xf32>
    %92 = vector.shape_cast %91 : vector<1x32x32xf32> to vector<32x32xf32>
    %cst_93 = arith.constant dense<0.000000e+00> : vector<1x32xf32>
    %93 = tpu.matmul %90, %92, %cst_93 {dimension_numbers = #tpu.dot_dimension_numbers<[1], [0], [0], [1], [0, 0, 1, 1], [], []>} : vector<1x32xf32>, vector<32x32xf32>, vector<1x32xf32> -> vector<1x32xf32>
    %c6_94 = arith.constant 6 : index
    %c0_95 = arith.constant 0 : index
    %94 = vector.load %arg2[%c6_94, %c0_95] : memref<8x32xf32, #tpu.memory_space<vmem>>, vector<1x32xf32>
    %95 = arith.addf %93, %94 : vector<1x32xf32>
    %cst_96 = arith.constant 0.000000e+00 : f32
    %96 = vector.broadcast %cst_96 : f32 to vector<1x32xf32>
    %97 = arith.maximumf %95, %96 : vector<1x32xf32>
    %c6_97 = arith.constant 6 : index
    %c0_98 = arith.constant 0 : index
    %c0_99 = arith.constant 0 : index
    %98 = vector.load %arg3[%c6_97, %c0_98, %c0_99] : memref<8x32x256xf32, #tpu.memory_space<vmem>>, vector<1x32x256xf32>
    %99 = vector.shape_cast %98 : vector<1x32x256xf32> to vector<32x256xf32>
    %cst_100 = arith.constant dense<0.000000e+00> : vector<1x256xf32>
    %100 = tpu.matmul %97, %99, %cst_100 {dimension_numbers = #tpu.dot_dimension_numbers<[1], [0], [0], [1], [0, 0, 1, 1], [], []>} : vector<1x32xf32>, vector<32x256xf32>, vector<1x256xf32> -> vector<1x256xf32>
    %c6_101 = arith.constant 6 : index
    %c0_102 = arith.constant 0 : index
    %101 = vector.load %arg4[%c6_101, %c0_102] : memref<8x256xf32, #tpu.memory_space<vmem>>, vector<1x256xf32>
    %102 = arith.addf %100, %101 : vector<1x256xf32>
    %cst_103 = arith.constant 0.000000e+00 : f32
    %103 = vector.broadcast %cst_103 : f32 to vector<1x256xf32>
    %104 = arith.maximumf %102, %103 : vector<1x256xf32>
    %c7 = arith.constant 7 : index
    %c0_104 = arith.constant 0 : index
    %105 = vector.load %arg0[%c7, %c0_104] : memref<8x32xf32, #tpu.memory_space<vmem>>, vector<1x32xf32>
    %c7_105 = arith.constant 7 : index
    %c0_106 = arith.constant 0 : index
    %c0_107 = arith.constant 0 : index
    %106 = vector.load %arg1[%c7_105, %c0_106, %c0_107] : memref<8x32x32xf32, #tpu.memory_space<vmem>>, vector<1x32x32xf32>
    %107 = vector.shape_cast %106 : vector<1x32x32xf32> to vector<32x32xf32>
    %cst_108 = arith.constant dense<0.000000e+00> : vector<1x32xf32>
    %108 = tpu.matmul %105, %107, %cst_108 {dimension_numbers = #tpu.dot_dimension_numbers<[1], [0], [0], [1], [0, 0, 1, 1], [], []>} : vector<1x32xf32>, vector<32x32xf32>, vector<1x32xf32> -> vector<1x32xf32>
    %c7_109 = arith.constant 7 : index
    %c0_110 = arith.constant 0 : index
    %109 = vector.load %arg2[%c7_109, %c0_110] : memref<8x32xf32, #tpu.memory_space<vmem>>, vector<1x32xf32>
    %110 = arith.addf %108, %109 : vector<1x32xf32>
    %cst_111 = arith.constant 0.000000e+00 : f32
    %111 = vector.broadcast %cst_111 : f32 to vector<1x32xf32>
    %112 = arith.maximumf %110, %111 : vector<1x32xf32>
    %c7_112 = arith.constant 7 : index
    %c0_113 = arith.constant 0 : index
    %c0_114 = arith.constant 0 : index
    %113 = vector.load %arg3[%c7_112, %c0_113, %c0_114] : memref<8x32x256xf32, #tpu.memory_space<vmem>>, vector<1x32x256xf32>
    %114 = vector.shape_cast %113 : vector<1x32x256xf32> to vector<32x256xf32>
    %cst_115 = arith.constant dense<0.000000e+00> : vector<1x256xf32>
    %115 = tpu.matmul %112, %114, %cst_115 {dimension_numbers = #tpu.dot_dimension_numbers<[1], [0], [0], [1], [0, 0, 1, 1], [], []>} : vector<1x32xf32>, vector<32x256xf32>, vector<1x256xf32> -> vector<1x256xf32>
    %c7_116 = arith.constant 7 : index
    %c0_117 = arith.constant 0 : index
    %116 = vector.load %arg4[%c7_116, %c0_117] : memref<8x256xf32, #tpu.memory_space<vmem>>, vector<1x256xf32>
    %117 = arith.addf %115, %116 : vector<1x256xf32>
    %cst_118 = arith.constant 0.000000e+00 : f32
    %118 = vector.broadcast %cst_118 : f32 to vector<1x256xf32>
    %119 = arith.maximumf %117, %118 : vector<1x256xf32>
    %120 = tpu.concatenate %14, %29, %44, %59, %74, %89, %104, %119 in 0 : vector<1x256xf32>, vector<1x256xf32>, vector<1x256xf32>, vector<1x256xf32>, vector<1x256xf32>, vector<1x256xf32>, vector<1x256xf32>, vector<1x256xf32> -> vector<8x256xf32>
    %cst_119 = arith.constant dense<0xFF800000> : vector<8xf32>
    %121 = vector.multi_reduction <maximumf>, %120, %cst_119 [1] : vector<8x256xf32> to vector<8xf32>
    %122 = vector.shape_cast %121 : vector<8xf32> to vector<8x1xf32>
    %123 = vector.broadcast %122 : vector<8x1xf32> to vector<8x256xf32>
    %124 = arith.subf %120, %123 : vector<8x256xf32>
    %125 = math.exp %124 : vector<8x256xf32>
    %cst_120 = arith.constant dense<0.000000e+00> : vector<8xf32>
    %126 = vector.multi_reduction <add>, %125, %cst_120 [1] : vector<8x256xf32> to vector<8xf32>
    %127 = vector.shape_cast %126 : vector<8xf32> to vector<8x1xf32>
    %128 = math.log %127 : vector<8x1xf32>
    %129 = vector.broadcast %128 : vector<8x1xf32> to vector<8x256xf32>
    %130 = arith.subf %124, %129 : vector<8x256xf32>
    %c0_121 = arith.constant 0 : index
    %c0_122 = arith.constant 0 : index
    %131 = vector.load %arg5[%c0_121, %c0_122] : memref<8x256xf32, #tpu.memory_space<vmem>>, vector<8x256xf32>
    tpu.vector_store %arg5[%c0_121, %c0_122], %130 {strides = array<i32>} : memref<8x256xf32, #tpu.memory_space<vmem>>, vector<8x256xf32>,
    return
  }
}

</mosaic_0001>

<bundles_post_ra>
// kernel: tpu_custom_call.1
= control target key start
LH: loop header
LB: loop body
LE: loop exit
PB: predicated region body
PF: predicated region fallthrough
CT: control target
= control target key end

     0   :  { %10 = vsyncpa [#allocation3], 0  ;;  %s1233_s0 = inlined_call_operand.hbm [shape: f32[8,32], index: 0, kind: input, shape index: {}]   ;;  %s1234_s1 = inlined_call_operand.hbm [shape: f32[8,32,32], index: 1, kind: input, shape index: {}]   ;;  %s1235_s2 = inlined_call_operand.hbm [shape: f32[8,32], index: 2, kind: input, shape index: {}]   ;;  %s1236_s3 = inlined_call_operand.hbm [shape: f32[8,32,256], index: 3, kind: input, shape index: {}]   ;;  %s1237_s4 = inlined_call_operand.hbm [shape: f32[8,256], index: 4, kind: input, shape index: {}]   ;;  %s1238_s5 = inlined_call_operand.hbm [shape: f32[8,256], index: 5, kind: output, shape index: {}]  }
   0x1   :  { %11 = vsyncpa [#allocation6], 0 }
   0x2   :  { %12 = vsyncpa [#allocation9], 0  ;;  %s29_s20 = sshll.u32 %s1234_s1, 4  ;;  %s30_s20 = int_to_ptr.hbm [resolvable:$true] %s29_s20 }
   0x3   :  { %13 = vsyncpa [#allocation4], 0  ;;  %s1119_s21 = smov [#allocation5]   ;;  %s53_s25 = sshll.u32 %s1236_s3, 4  ;;  %s54_s25 = int_to_ptr.hbm [resolvable:$true] %s53_s25 }
   0x4   :  { %s31_s22 = sshll.u32 %s1119_s21, 4  ;;  %s1120_s26 = smov 128   ;;  %s32_s22 = int_to_ptr.vmem [resolvable:$true] %s31_s22 }
   0x5   :  { %s1121_s27 = smov 8   ;;  %s1122_s28 = smov [#allocation8]  }
   0x6   :  { %37 = dma.hbm_to_vmem [thread:$0]  %s30_s20, 4096, %s32_s22, [#allocation6], %s1120_s26, %s1120_s26, %s1121_s27  }
   0x7   :  { %s55_s29 = sshll.u32 %s1122_s28, 4  ;;  %s1123_s30 = smov 256   ;;  %s56_s29 = int_to_ptr.vmem [resolvable:$true] %s55_s29 }
   0x8   :  { %s1124_s6 = smov 16   ;;  %s19_s8 = sshll.u32 %s1233_s0, 4  ;;  %s20_s8 = int_to_ptr.hbm [resolvable:$true] %s19_s8 }
   0x9   :  { %61 = dma.hbm_to_vmem [thread:$0]  %s54_s25, 8192, %s56_s29, [#allocation9], %s1123_s30, %s1123_s30, %s1124_s6  }
   0xa   :  { %s1125_s9 = smov [#allocation2]   ;;  %s43_s12 = sshll.u32 %s1235_s2, 4  ;;  %s44_s12 = int_to_ptr.hbm [resolvable:$true] %s43_s12 }
   0xb   :  { %s21_s10 = sshll.u32 %s1125_s9, 4  ;;  %s1126_s13 = smov [#allocation7]   ;;  %s22_s10 = int_to_ptr.vmem [resolvable:$true] %s21_s10 }
   0xc   :  { %24 = dma.hbm_to_vmem [thread:$0]  %s20_s8, 128, %s22_s10, [#allocation3]  }
   0xd   :  { %s45_s14 = sshll.u32 %s1126_s13, 4  ;;  %s67_s17 = sshll.u32 %s1237_s4, 4  ;;  %s46_s14 = int_to_ptr.vmem [resolvable:$true] %s45_s14  ;;  %s68_s17 = int_to_ptr.hbm [resolvable:$true] %s67_s17 }
   0xe   :  { %48 = dma.hbm_to_vmem [thread:$0]  %s44_s12, 128, %s46_s14, [#allocation6]  }
   0xf   :  { %s1127_s0 = smov [#allocation10]  }
  0x10   :  { %s69_s18 = sshll.u32 %s1127_s0, 4  ;;  %s70_s18 = int_to_ptr.vmem [resolvable:$true] %s69_s18 }
  0x11   :  { %72 = dma.hbm_to_vmem [thread:$0]  %s68_s17, 256, %s70_s18, [#allocation9]  }
  0x12   :  { %1111 = dma.done.wait [#allocation3], 128  }
  0x13   :  { %1112 = vsyncadd [#allocation3], 4294967168 }
  0x14   :  { %1113 = dma.done.wait [#allocation6], 4224  }
  0x15   :  { %1114 = vsyncadd [#allocation6], 4294963072 }
  0x16   :  { %1115 = dma.done.wait [#allocation9], 8448  }
  0x17   :  { %1116 = vsyncadd [#allocation9], 4294958848  ;;  %v97_v0 = vld [vmem:[#allocation5 + $0x18] sm:$0xff]  ;;  %v96_v2 = vld [vmem:[#allocation5 + $0x10] sm:$0xff]  ;;  %vm99_vm0 = vcmask 261120   ;;  %vm869_vm1 = vcmask 1040384  }
  0x18   :  { %v188_v1 = vld [vmem:[#allocation5 + $0x38] sm:$0xff]  ;;  %115 = vmatpush.msra.mxu0 %v97_v0  ;;  %v187_v3 = vld [vmem:[#allocation5 + $0x30] sm:$0xff]  ;;  %v95_v4 = vld [vmem:[#allocation5 + $0x8] sm:$0xff]  ;;  %vm872_vm2 = vcmask 1041408   ;;  %vm875_vm3 = vcmask 1042432   ;;  %vm878_vm4 = vcmask 1043456  }
  0x19   :  { %205 = vmatpush.msra.mxu3 %v188_v1  ;;  %v186_v5 = vld [vmem:[#allocation5 + $0x28] sm:$0xff]  ;;  %v130_v6 = vld [vmem:[#allocation8 + $0x30] sm:$0xff]  ;;  %v131_v7 = vld [vmem:[#allocation8 + $0x38] sm:$0xff]  ;;  %vm881_vm5 = vcmask 1044480   ;;  %vm884_vm6 = vcmask 1045504   ;;  %vm887_vm7 = vcmask 1046528  }
  0x1a   :  { %116 = vmatpush.msra.mxu0 %v96_v2  ;;  %v94_v8 = vld [vmem:[#allocation5] sm:$0xff]  ;;  %153 = vmatpush.msra.mxu1 %v130_v6  ;;  %v93_v10 = vld [vmem:[#allocation2] sm:$0x1]  ;;  %v183_v11 = vld [vmem:[#allocation2 + $0x1] sm:$0x1]  ;;  %s1128_s2 = smov [#allocation11]  }
  0x1b   :  { %206 = vmatpush.msra.mxu3 %v187_v3  ;;  %v185_v9 = vld [vmem:[#allocation5 + $0x20] sm:$0xff]  ;;  %173 = vmatpush.msra.mxu2 %v131_v7  ;;  %v128_v12 = vld [vmem:[#allocation8 + $0x20] sm:$0xff]  ;;  %v129_v13 = vld [vmem:[#allocation8 + $0x28] sm:$0xff]  ;;  %s913_s4 = sshll.u32 %s1128_s2, 4  ;;  %s915_s21 = sshll.u32 %s1238_s5, 4  ;;  %s914_s4 = int_to_ptr.vmem [resolvable:$true] %s913_s4  ;;  %s916_s21 = int_to_ptr.hbm [resolvable:$true] %s915_s21 }
  0x1c   :  { %117 = vmatpush.msra.mxu0 %v95_v4  ;;  %154 = vmatpush.msra.mxu1 %v128_v12  ;;  %v126_v14 = vld [vmem:[#allocation8 + $0x10] sm:$0xff]  ;;  %v127_v15 = vld [vmem:[#allocation8 + $0x18] sm:$0xff]  ;;  %v124_v16 = vld [vmem:[#allocation8] sm:$0xff] }
  0x1d   :  { %207 = vmatpush.msra.mxu3 %v186_v5  ;;  %174 = vmatpush.msra.mxu2 %v129_v13  ;;  %v125_v17 = vld [vmem:[#allocation8 + $0x8] sm:$0xff]  ;;  %v221_v18 = vld [vmem:[#allocation8 + $0x70] sm:$0xff]  ;;  %v219_v20 = vld [vmem:[#allocation8 + $0x60] sm:$0xff] }
  0x1e   :  { %118 = vmatpush.msra.mxu0 %v94_v8  ;;  %155 = vmatpush.msra.mxu1 %v126_v14  ;;  %v280_v19 = vld [vmem:[#allocation5 + $0x58] sm:$0xff]  ;;  %v222_v21 = vld [vmem:[#allocation8 + $0x78] sm:$0xff]  ;;  %v279_v22 = vld [vmem:[#allocation5 + $0x50] sm:$0xff] }
  0x1f   :  { %208 = vmatpush.msra.mxu3 %v185_v9  ;;  %927 = vmatmul.msk.f32.vlgmr.msra.gmra.mxu0 %vm99_vm0, %v93_v10  ;;  %v217_v23 = vld [vmem:[#allocation8 + $0x50] sm:$0xff]  ;;  %v220_v24 = vld [vmem:[#allocation8 + $0x68] sm:$0xff]  ;;  %v278_v25 = vld [vmem:[#allocation5 + $0x48] sm:$0xff] }
  0x20   :  { %930 = vmatmul.msk.f32.vlgmr.msra.gmra.mxu3 %vm99_vm0, %v183_v11  ;;  %175 = vmatpush.msra.mxu2 %v127_v15  ;;  %v215_v26 = vld [vmem:[#allocation8 + $0x40] sm:$0xff]  ;;  %v218_v27 = vld [vmem:[#allocation8 + $0x58] sm:$0xff]  ;;  %v216_v29 = vld [vmem:[#allocation8 + $0x48] sm:$0xff] }
  0x21   :  { %156 = vmatpush.msra.mxu1 %v124_v16  ;;  %245 = vmatpush.msrb.mxu0 %v221_v18  ;;  %v277_v28 = vld [vmem:[#allocation5 + $0x40] sm:$0xff]  ;;  %v372_v34 = vld [vmem:[#allocation5 + $0x78] sm:$0xff]  ;;  %v371_v36 = vld [vmem:[#allocation5 + $0x70] sm:$0xff] }
  0x22   :  { %176 = vmatpush.msra.mxu2 %v125_v17  ;;  %v98_v30 = vld [vmem:[#allocation7] sm:$0x1]  ;;  %v189_v35 = vld [vmem:[#allocation7 + $0x1] sm:$0x1]  ;;  %v370_v39 = vld [vmem:[#allocation5 + $0x68] sm:$0xff] }
  0x23   :  { %246 = vmatpush.msrb.mxu0 %v219_v20  ;;  %265 = vmatpush.msrb.mxu1 %v222_v21  ;;  %v369_v41 = vld [vmem:[#allocation5 + $0x60] sm:$0xff]  ;;  %v275_v42 = vld [vmem:[#allocation2 + $0x2] sm:$0x1]  ;;  %v367_v43 = vld [vmem:[#allocation2 + $0x3] sm:$0x1] }
  0x24   :  { %297 = vmatpush.msrb.mxu2 %v280_v19  ;;  %v313_v44 = vld [vmem:[#allocation8 + $0xb0] sm:$0xff]  ;;  %v314_v45 = vld [vmem:[#allocation8 + $0xb8] sm:$0xff]  ;;  %v311_v46 = vld [vmem:[#allocation8 + $0xa0] sm:$0xff] }
  0x25   :  { %247 = vmatpush.msrb.mxu0 %v217_v23  ;;  %266 = vmatpush.msrb.mxu1 %v220_v24  ;;  %v312_v47 = vld [vmem:[#allocation8 + $0xa8] sm:$0xff]  ;;  %v405_v48 = vld [vmem:[#allocation8 + $0xf0] sm:$0xff]  ;;  %v310_v50 = vld [vmem:[#allocation8 + $0x98] sm:$0xff] }
  0x26   :  { %298 = vmatpush.msrb.mxu2 %v279_v22  ;;  %337 = vmatpush.msrb.mxu3 %v313_v44  ;;  %v309_v49 = vld [vmem:[#allocation8 + $0x90] sm:$0xff]  ;;  %v403_v51 = vld [vmem:[#allocation8 + $0xe0] sm:$0xff]  ;;  %v308_v53 = vld [vmem:[#allocation8 + $0x88] sm:$0xff] }
  0x27   :  { %248 = vmatpush.msrb.mxu0 %v215_v26  ;;  %267 = vmatpush.msrb.mxu1 %v218_v27  ;;  %v307_v52 = vld [vmem:[#allocation8 + $0x80] sm:$0xff]  ;;  %v401_v54 = vld [vmem:[#allocation8 + $0xd0] sm:$0xff]  ;;  %v406_v55 = vld [vmem:[#allocation8 + $0xf8] sm:$0xff] }
  0x28   :  { %299 = vmatpush.msrb.mxu2 %v278_v25  ;;  %338 = vmatpush.msrb.mxu3 %v311_v46  ;;  %v464_v56 = vld [vmem:[#allocation5 + $0x98] sm:$0xff]  ;;  %v399_v57 = vld [vmem:[#allocation8 + $0xc0] sm:$0xff]  ;;  %v404_v58 = vld [vmem:[#allocation8 + $0xe8] sm:$0xff] }
  0x29   :  { %268 = vmatpush.msrb.mxu1 %v216_v29  ;;  %357 = vmatpush.msra.mxu0 %v314_v45  ;;  %v463_v59 = vld [vmem:[#allocation5 + $0x90] sm:$0xff]  ;;  %v402_v60 = vld [vmem:[#allocation8 + $0xd8] sm:$0xff]  ;;  %v462_v61 = vld [vmem:[#allocation5 + $0x88] sm:$0xff] }
  0x2a   :  { %300 = vmatpush.msrb.mxu2 %v277_v28  ;;  %339 = vmatpush.msrb.mxu3 %v309_v49  ;;  %v400_v62 = vld [vmem:[#allocation8 + $0xc8] sm:$0xff]  ;;  %v461_v63 = vld [vmem:[#allocation5 + $0x80] sm:$0xff]  ;;  %v556_v20 = vld [vmem:[#allocation5 + $0xb8] sm:$0xff] }
  0x2b   :  { %358 = vmatpush.msra.mxu0 %v312_v47  ;;  %v1184_v1 = vld [vmem:[#allocation10] ss:$8 sm:$0x3]  ;;  %v1186_v2 = vld [vmem:[#allocation10 + $0x1] ss:$8 sm:$0x3] }
  0x2c   :  { %340 = vmatpush.msrb.mxu3 %v307_v52  ;;  %v135_v3 = vperm.slane %v1184_v1, 1  ;;  %v227_v4 = vperm.slane %v1186_v2, 1  ;;  %v281_v10 = vld [vmem:[#allocation7 + $0x2] sm:$0x1]  ;;  %v373_v14 = vld [vmem:[#allocation7 + $0x3] sm:$0x1] }
  0x2d   :  { %359 = vmatpush.msra.mxu0 %v310_v50  ;;  %v555_v22 = vld [vmem:[#allocation5 + $0xb0] sm:$0xff]  ;;  %v554_v23 = vld [vmem:[#allocation5 + $0xa8] sm:$0xff]  ;;  %v553_v24 = vld [vmem:[#allocation5 + $0xa0] sm:$0xff]  ;;  %v226_v49 = vperm.slane %v1186_v2, 0 }
  0x2e   :  { %449 = vmatpush.msra.mxu3 %v406_v55  ;;  %v459_v25 = vld [vmem:[#allocation2 + $0x4] sm:$0x1]  ;;  %v551_v26 = vld [vmem:[#allocation2 + $0x5] sm:$0x1]  ;;  %v498_v27 = vld [vmem:[#allocation8 + $0x138] sm:$0xff] }
  0x2f   :  { %360 = vmatpush.msra.mxu0 %v308_v53  ;;  %v497_v28 = vld [vmem:[#allocation8 + $0x130] sm:$0xff]  ;;  %v496_v29 = vld [vmem:[#allocation8 + $0x128] sm:$0xff]  ;;  %v583_v47 = vld [vmem:[#allocation8 + $0x140] sm:$0xff] }
  0x30   :  { %450 = vmatpush.msra.mxu3 %v404_v58  ;;  %v585_v44 = vld [vmem:[#allocation8 + $0x150] sm:$0xff]  ;;  %v584_v46 = vld [vmem:[#allocation8 + $0x148] sm:$0xff] }
  0x32   :  { %451 = vmatpush.msra.mxu3 %v402_v60 }
  0x34   :  { %452 = vmatpush.msra.mxu3 %v400_v62 }
  0x9c   :  { %v120_v31 = vpop.f32.mrf.mxu0 }
  0x9d   :  { %v121_v32 = vadd.f32 %v120_v31, %v98_v30  ;;  %v495_v30 = vld [vmem:[#allocation8 + $0x120] sm:$0xff]  ;;  %v494_v31 = vld [vmem:[#allocation8 + $0x118] sm:$0xff] }
  0x9f   :  { %v123_v33 = vmax.f32 %v121_v32, 0.0  ;;  %v493_v32 = vld [vmem:[#allocation8 + $0x110] sm:$0xff] }
  0xa1   :  { %928 = vmatmul.msk.f32.vlgmr.msra.gmra.mxu1 %vm99_vm0, %v123_v33  ;;  %929 = vmatmul.msk.f32.vlgmr.msra.gmra.mxu2 %vm99_vm0, %v123_v33  ;;  %v492_v33 = vld [vmem:[#allocation8 + $0x108] sm:$0xff] }
  0xa2   :  { %389 = vmatpush.msra.mxu1 %v372_v34  ;;  %429 = vmatpush.msra.mxu2 %v405_v48  ;;  %v491_v34 = vld [vmem:[#allocation8 + $0x100] sm:$0xff] }
  0xa3   :  { %v210_v37 = vpop.f32.mrf.mxu3  ;;  %v316_v48 = vld [vmem:[#allocation10 + $0x2] ss:$8 sm:$0x3] }
  0xa4   :  { %v211_v38 = vadd.f32 %v210_v37, %v189_v35  ;;  %390 = vmatpush.msra.mxu1 %v371_v36  ;;  %430 = vmatpush.msra.mxu2 %v403_v51  ;;  %v648_v35 = vld [vmem:[#allocation5 + $0xd8] sm:$0xff]  ;;  %v647_v36 = vld [vmem:[#allocation5 + $0xd0] sm:$0xff]  ;;  %v646_v37 = vld [vmem:[#allocation5 + $0xc8] sm:$0xff]  ;;  %v319_v50 = vperm.slane %v316_v48, 1 }
  0xa6   :  { %v213_v40 = vmax.f32 %v211_v38, 0.0  ;;  %391 = vmatpush.msra.mxu1 %v370_v39  ;;  %431 = vmatpush.msra.mxu2 %v401_v54  ;;  %v590_v38 = vld [vmem:[#allocation8 + $0x178] sm:$0xff]  ;;  %v134_v54 = vperm.slane %v1184_v1, 0 }
  0xa7   :  { %v645_v39 = vld [vmem:[#allocation5 + $0xc0] sm:$0xff] }
  0xa8   :  { %931 = vmatmul.msk.f32.vlgmr.msrb.gmra.mxu0 %vm99_vm0, %v213_v40  ;;  %392 = vmatpush.msra.mxu1 %v369_v41  ;;  %v588_v41 = vld [vmem:[#allocation8 + $0x168] sm:$0xff] }
  0xa9   :  { %932 = vmatmul.msk.f32.vlgmr.msrb.gmra.mxu1 %vm99_vm0, %v213_v40  ;;  %933 = vmatmul.msk.f32.vlgmr.msrb.gmra.mxu2 %vm99_vm0, %v275_v42  ;;  %v589_v40 = vld [vmem:[#allocation8 + $0x170] sm:$0xff]  ;;  %v587_v42 = vld [vmem:[#allocation8 + $0x160] sm:$0xff] }
  0xaa   :  { %481 = vmatpush.msrb.mxu0 %v464_v56  ;;  %432 = vmatpush.msra.mxu2 %v399_v57  ;;  %v318_v56 = vperm.slane %v316_v48, 0 }
  0xab   :  { %521 = vmatpush.msrb.mxu1 %v497_v28  ;;  %v679_v28 = vld [vmem:[#allocation8 + $0x1a0] sm:$0xff] }
  0xac   :  { %482 = vmatpush.msrb.mxu0 %v463_v59  ;;  %541 = vmatpush.msrb.mxu2 %v498_v27  ;;  %v682_v27 = vld [vmem:[#allocation8 + $0x1b8] sm:$0xff] }
  0xad   :  { %522 = vmatpush.msrb.mxu1 %v495_v30  ;;  %v677_v30 = vld [vmem:[#allocation8 + $0x190] sm:$0xff] }
  0xae   :  { %483 = vmatpush.msrb.mxu0 %v462_v61  ;;  %542 = vmatpush.msrb.mxu2 %v496_v29  ;;  %v465_v61 = vld [vmem:[#allocation7 + $0x4] sm:$0x1]  ;;  %v680_v29 = vld [vmem:[#allocation8 + $0x1a8] sm:$0xff] }
  0xaf   :  { %523 = vmatpush.msrb.mxu1 %v493_v32  ;;  %v675_v32 = vld [vmem:[#allocation8 + $0x180] sm:$0xff] }
  0xb0   :  { %484 = vmatpush.msrb.mxu0 %v461_v63  ;;  %543 = vmatpush.msrb.mxu2 %v494_v31  ;;  %v678_v31 = vld [vmem:[#allocation8 + $0x198] sm:$0xff] }
  0xb1   :  { %936 = vmatmul.msk.f32.vlgmr.msra.gmra.mxu1 %vm99_vm0, %v367_v43  ;;  %v586_v43 = vld [vmem:[#allocation8 + $0x158] sm:$0xff] }
  0xb2   :  { %544 = vmatpush.msrb.mxu2 %v492_v33  ;;  %524 = vmatpush.msrb.mxu1 %v491_v34  ;;  %v676_v33 = vld [vmem:[#allocation8 + $0x188] sm:$0xff]  ;;  %v773_v34 = vld [vmem:[#allocation8 + $0x1f0] sm:$0xff] }
  0xb4   :  { %633 = vmatpush.msra.mxu1 %v590_v38 }
  0xb6   :  { %634 = vmatpush.msra.mxu1 %v588_v41  ;;  %v770_v41 = vld [vmem:[#allocation8 + $0x1d8] sm:$0xff] }
  0xb8   :  { %635 = vmatpush.msra.mxu1 %v586_v43  ;;  %v768_v43 = vld [vmem:[#allocation8 + $0x1c8] sm:$0xff] }
  0xba   :  { %636 = vmatpush.msra.mxu1 %v584_v46 }
 0x11e   :  { %v1182_v0 = vpop.f32.mrf.mxu1 }
 0x11f   :  { %v159_v59 = vadd.f32 %v1182_v0, %v134_v54 }
 0x124   :  { %v178_v5 = vpop.f32.mrf.mxu2 }
 0x125   :  { %v179_v7 = vadd.f32 %v178_v5, %v135_v3  ;;  %v250_v45 = vpop.f32.mrf.mxu0 }
 0x126   :  { %v270_v6 = vpop.f32.mrf.mxu1  ;;  %v251_v51 = vadd.f32 %v250_v45, %v226_v49  ;;  %v500_v45 = vld [vmem:[#allocation10 + $0x4] ss:$8 sm:$0x3] }
 0x127   :  { %v271_v8 = vadd.f32 %v270_v6, %v227_v4  ;;  %v182_v11 = vmax.f32 %v179_v7, 0.0  ;;  %v181_v6 = vmax.f32 %v159_v59, 0.0  ;;  %v1204_v7 = vld [vmem:[#allocation10 + $0x3] ss:$8 sm:$0x3]  ;;  %v502_v46 = vperm.slane %v500_v45, 0 }
 0x128   :  { %v273_v57 = vmax.f32 %v251_v51, 0.0  ;;  %v410_v38 = vperm.slane %v1204_v7, 0 }
 0x129   :  { %v274_v9 = vmax.f32 %v271_v8, 0.0 }
 0x12a   :  { %v829_v2 = vrot.slane %v273_v57, 7 }
 0x12b   :  { %v830_v12 = vrot.slane %v274_v9, 7  ;;  %v411_v9 = vperm.slane %v1204_v7, 1 }
 0x12c   :  { %v302_v13 = vpop.f32.mrf.mxu2  ;;  %v870_v0 = vsel %vm869_vm1, %v181_v6, %v829_v2 }
 0x12d   :  { %v1191_v15 = vsel %vm869_vm1, %v182_v11, %v830_v12  ;;  %v303_v16 = vadd.f32 %v302_v13, %v281_v10  ;;  %v740_v10 = vld [vmem:[#allocation5 + $0xf8] sm:$0xff]  ;;  %v739_v12 = vld [vmem:[#allocation5 + $0xf0] sm:$0xff] }
 0x12e   :  { %v394_v17 = vpop.f32.mrf.mxu1 }
 0x12f   :  { %v305_v18 = vmax.f32 %v303_v16, 0.0  ;;  %v395_v19 = vadd.f32 %v394_v17, %v373_v14  ;;  %v737_v17 = vld [vmem:[#allocation5 + $0xe0] sm:$0xff] }
 0x131   :  { %v397_v21 = vmax.f32 %v395_v19, 0.0  ;;  %934 = vmatmul.msk.f32.vlgmr.msrb.gmra.mxu3 %vm99_vm0, %v305_v18  ;;  %935 = vmatmul.msk.f32.vlgmr.msra.gmra.mxu0 %vm99_vm0, %v305_v18  ;;  %v643_v18 = vld [vmem:[#allocation2 + $0x6] sm:$0x1] }
 0x132   :  { %573 = vmatpush.msrb.mxu3 %v556_v20  ;;  %613 = vmatpush.msra.mxu0 %v589_v40  ;;  %v557_v20 = vld [vmem:[#allocation7 + $0x5] sm:$0x1]  ;;  %v769_v40 = vld [vmem:[#allocation8 + $0x1d0] sm:$0xff] }
 0x133   :  { %937 = vmatmul.msk.f32.vlgmr.msra.gmra.mxu2 %vm99_vm0, %v397_v21 }
 0x134   :  { %574 = vmatpush.msrb.mxu3 %v555_v22  ;;  %665 = vmatpush.msra.mxu2 %v648_v35  ;;  %v774_v35 = vld [vmem:[#allocation8 + $0x1f8] sm:$0xff] }
 0x135   :  { %614 = vmatpush.msra.mxu0 %v587_v42  ;;  %v767_v42 = vld [vmem:[#allocation8 + $0x1c0] sm:$0xff] }
 0x136   :  { %575 = vmatpush.msrb.mxu3 %v554_v23  ;;  %666 = vmatpush.msra.mxu2 %v647_v36  ;;  %v771_v36 = vld [vmem:[#allocation8 + $0x1e0] sm:$0xff] }
 0x137   :  { %615 = vmatpush.msra.mxu0 %v585_v44 }
 0x138   :  { %576 = vmatpush.msrb.mxu3 %v553_v24  ;;  %667 = vmatpush.msra.mxu2 %v646_v37  ;;  %v772_v37 = vld [vmem:[#allocation8 + $0x1e8] sm:$0xff] }
 0x139   :  { %938 = vmatmul.msk.f32.vlgmr.msra.gmra.mxu3 %vm99_vm0, %v397_v21  ;;  %939 = vmatmul.msk.f32.vlgmr.msrb.gmra.mxu0 %vm99_vm0, %v459_v25  ;;  %v735_v25 = vld [vmem:[#allocation2 + $0x7] sm:$0x1] }
 0x13a   :  { %668 = vmatpush.msra.mxu2 %v645_v39  ;;  %616 = vmatpush.msra.mxu0 %v583_v47 }
 0x13c   :  { %725 = vmatpush.msrb.mxu0 %v682_v27 }
 0x13e   :  { %726 = vmatpush.msrb.mxu0 %v680_v29 }
 0x140   :  { %727 = vmatpush.msrb.mxu0 %v678_v31 }
 0x141   :  { %942 = vmatmul.msk.f32.vlgmr.msrb.gmra.mxu3 %vm99_vm0, %v551_v26  ;;  %v681_v26 = vld [vmem:[#allocation8 + $0x1b0] sm:$0xff] }
 0x142   :  { %705 = vmatpush.msra.mxu3 %v681_v26  ;;  %728 = vmatpush.msrb.mxu0 %v676_v33 }
 0x144   :  { %706 = vmatpush.msra.mxu3 %v679_v28 }
 0x146   :  { %707 = vmatpush.msra.mxu3 %v677_v30 }
 0x148   :  { %708 = vmatpush.msra.mxu3 %v675_v32 }
 0x14a   :  { %817 = vmatpush.msrb.mxu3 %v774_v35 }
 0x14c   :  { %818 = vmatpush.msrb.mxu3 %v772_v37 }
 0x14e   :  { %819 = vmatpush.msrb.mxu3 %v770_v41 }
 0x150   :  { %820 = vmatpush.msrb.mxu3 %v768_v43 }
 0x1ae   :  { %v362_v52 = vpop.f32.mrf.mxu0 }
 0x1af   :  { %v363_v53 = vadd.f32 %v362_v52, %v319_v50  ;;  %v503_v52 = vperm.slane %v500_v45, 1 }
 0x1b1   :  { %v366_v55 = vmax.f32 %v363_v53, 0.0 }
 0x1b3   :  { %v836_v58 = vrot.slane %v366_v55, 6 }
 0x1b4   :  { %v342_v60 = vpop.f32.mrf.mxu3 }
 0x1b5   :  { %v874_v62 = vsel %vm872_vm2, %v1191_v15, %v836_v58  ;;  %v343_v63 = vadd.f32 %v342_v60, %v318_v56  ;;  %v738_v15 = vld [vmem:[#allocation5 + $0xe8] sm:$0xff] }
 0x1b6   :  { %v486_v3 = vpop.f32.mrf.mxu0  ;;  %v434_v39 = vpop.f32.mrf.mxu2  ;;  %v592_v58 = vld [vmem:[#allocation10 + $0x5] ss:$8 sm:$0x3] }
 0x1b7   :  { %v365_v4 = vmax.f32 %v343_v63, 0.0  ;;  %v487_v5 = vadd.f32 %v486_v3, %v465_v61  ;;  %v435_v44 = vadd.f32 %v434_v39, %v410_v38  ;;  %v595_v61 = vperm.slane %v592_v58, 1  ;;  %v649_v63 = vld [vmem:[#allocation7 + $0x6] sm:$0x1] }
 0x1b9   :  { %v835_v1 = vrot.slane %v365_v4, 6  ;;  %v489_v8 = vmax.f32 %v487_v5, 0.0  ;;  %v457_v47 = vmax.f32 %v435_v44, 0.0 }
 0x1bb   :  { %v1209_v11 = vsel %vm872_vm2, %v870_v0, %v835_v1  ;;  %940 = vmatmul.msk.f32.vlgmr.msrb.gmra.mxu1 %vm99_vm0, %v489_v8  ;;  %941 = vmatmul.msk.f32.vlgmr.msrb.gmra.mxu2 %vm99_vm0, %v489_v8  ;;  %v841_v50 = vrot.slane %v457_v47, 5  ;;  %v741_v8 = vld [vmem:[#allocation7 + $0x7] sm:$0x1] }
 0x1bc   :  { %v454_v13 = vpop.f32.mrf.mxu3  ;;  %757 = vmatpush.msrb.mxu1 %v740_v10  ;;  %797 = vmatpush.msrb.mxu2 %v773_v34 }
 0x1bd   :  { %v455_v14 = vadd.f32 %v454_v13, %v411_v9  ;;  %v876_v54 = vsel %vm875_vm3, %v1209_v11, %v841_v50  ;;  %v684_v13 = vld [vmem:[#allocation10 + $0x6] ss:$8 sm:$0x3] }
 0x1be   :  { %758 = vmatpush.msrb.mxu1 %v739_v12  ;;  %798 = vmatpush.msrb.mxu2 %v771_v36 }
 0x1bf   :  { %v458_v16 = vmax.f32 %v455_v14, 0.0  ;;  %v594_v14 = vperm.slane %v592_v58, 0 }
 0x1c0   :  { %759 = vmatpush.msrb.mxu1 %v738_v15  ;;  %799 = vmatpush.msrb.mxu2 %v769_v40  ;;  %v686_v15 = vperm.slane %v684_v13, 0 }
 0x1c1   :  { %v842_v19 = vrot.slane %v458_v16, 5  ;;  %v687_v16 = vperm.slane %v684_v13, 1 }
 0x1c2   :  { %760 = vmatpush.msrb.mxu1 %v737_v17  ;;  %800 = vmatpush.msrb.mxu2 %v767_v42 }
 0x1c3   :  { %v1214_v21 = vsel %vm875_vm3, %v874_v62, %v842_v19  ;;  %945 = vmatmul.msk.f32.vlgmr.msra.gmra.mxu2 %vm99_vm0, %v643_v18 }
 0x1c4   :  { %v578_v22 = vpop.f32.mrf.mxu3 }
 0x1c5   :  { %v579_v23 = vadd.f32 %v578_v22, %v557_v20 }
 0x1c7   :  { %v581_v24 = vmax.f32 %v579_v23, 0.0 }
 0x1c9   :  { %943 = vmatmul.msk.f32.vlgmr.msra.gmra.mxu0 %vm99_vm0, %v581_v24  ;;  %944 = vmatmul.msk.f32.vlgmr.msra.gmra.mxu1 %vm99_vm0, %v581_v24 }
 0x1d1   :  { %948 = vmatmul.msk.f32.vlgmr.msrb.gmra.mxu1 %vm99_vm0, %v735_v25 }
 0x238   :  { %v526_v48 = vpop.f32.mrf.mxu1 }
 0x239   :  { %v527_v49 = vadd.f32 %v526_v48, %v502_v46 }
 0x23b   :  { %v549_v51 = vmax.f32 %v527_v49, 0.0 }
 0x23d   :  { %v847_v53 = vrot.slane %v549_v51, 4 }
 0x23e   :  { %v546_v55 = vpop.f32.mrf.mxu2 }
 0x23f   :  { %v879_v56 = vsel %vm878_vm4, %v876_v54, %v847_v53  ;;  %v547_v57 = vadd.f32 %v546_v55, %v503_v52 }
 0x241   :  { %v550_v59 = vmax.f32 %v547_v57, 0.0 }
 0x243   :  { %v848_v60 = vrot.slane %v550_v59, 4 }
 0x245   :  { %v880_v62 = vsel %vm878_vm4, %v1214_v21, %v848_v60  ;;  %v776_v21 = vld [vmem:[#allocation10 + $0x7] ss:$8 sm:$0x3] }
 0x246   :  { %v638_v2 = vpop.f32.mrf.mxu1  ;;  %v670_v4 = vpop.f32.mrf.mxu2  ;;  %v778_v24 = vperm.slane %v776_v21, 0  ;;  %v779_v26 = vperm.slane %v776_v21, 1 }
 0x247   :  { %v639_v3 = vadd.f32 %v638_v2, %v595_v61  ;;  %v671_v5 = vadd.f32 %v670_v4, %v649_v63  ;;  %v618_v12 = vpop.f32.mrf.mxu0 }
 0x248   :  { %v619_v18 = vadd.f32 %v618_v12, %v594_v14 }
 0x249   :  { %v642_v6 = vmax.f32 %v639_v3, 0.0  ;;  %v673_v7 = vmax.f32 %v671_v5, 0.0 }
 0x24a   :  { %v641_v23 = vmax.f32 %v619_v18, 0.0 }
 0x24b   :  { %v854_v1 = vrot.slane %v642_v6, 3  ;;  %946 = vmatmul.msk.f32.vlgmr.msra.gmra.mxu3 %vm99_vm0, %v673_v7  ;;  %947 = vmatmul.msk.f32.vlgmr.msrb.gmra.mxu0 %vm99_vm0, %v673_v7 }
 0x24c   :  { %v853_v29 = vrot.slane %v641_v23, 3 }
 0x24d   :  { %v883_v9 = vsel %vm881_vm5, %v880_v62, %v854_v1 }
 0x24e   :  { %v762_v10 = vpop.f32.mrf.mxu1  ;;  %v882_v38 = vsel %vm881_vm5, %v879_v56, %v853_v29 }
 0x24f   :  { %v763_v0 = vadd.f32 %v762_v10, %v741_v8 }
 0x251   :  { %v765_v11 = vmax.f32 %v763_v0, 0.0 }
 0x253   :  { %949 = vmatmul.msk.f32.vlgmr.msrb.gmra.mxu2 %vm99_vm0, %v765_v11  ;;  %950 = vmatmul.msk.f32.vlgmr.msrb.gmra.mxu3 %vm99_vm0, %v765_v11 }
 0x2c8   :  { %v730_v17 = vpop.f32.mrf.mxu0 }
 0x2c9   :  { %v731_v22 = vadd.f32 %v730_v17, %v687_v16 }
 0x2cb   :  { %v734_v27 = vmax.f32 %v731_v22, 0.0 }
 0x2cd   :  { %v860_v34 = vrot.slane %v734_v27, 2 }
 0x2ce   :  { %v710_v19 = vpop.f32.mrf.mxu3 }
 0x2cf   :  { %v711_v20 = vadd.f32 %v710_v19, %v686_v15  ;;  %v886_v41 = vsel %vm884_vm6, %v883_v9, %v860_v34 }
 0x2d1   :  { %v733_v25 = vmax.f32 %v711_v20, 0.0 }
 0x2d3   :  { %v859_v32 = vrot.slane %v733_v25, 2 }
 0x2d5   :  { %v885_v40 = vsel %vm884_vm6, %v882_v38, %v859_v32 }
 0x2d6   :  { %v802_v28 = vpop.f32.mrf.mxu2  ;;  %v822_v31 = vpop.f32.mrf.mxu3 }
 0x2d7   :  { %v803_v30 = vadd.f32 %v802_v28, %v778_v24  ;;  %v823_v33 = vadd.f32 %v822_v31, %v779_v26 }
 0x2d9   :  { %v825_v35 = vmax.f32 %v803_v30, 0.0  ;;  %v826_v36 = vmax.f32 %v823_v33, 0.0 }
 0x2db   :  { %v865_v37 = vrot.slane %v825_v35, 1  ;;  %v866_v39 = vrot.slane %v826_v36, 1 }
 0x2dd   :  { %v888_v42 = vsel %vm887_vm7, %v885_v40, %v865_v37  ;;  %v889_v43 = vsel %vm887_vm7, %v886_v41, %v866_v39 }
 0x2de   :  { %v890_v44 = vmax.f32 %v888_v42, %v889_v43 }
 0x2e0   :  { %891 = vmax.xlane.f32.xlu0 %v890_v44 }
 0x353   :  { %v892_v45 = vpop.xlane.xlu0 %891 }
 0x354   :  { %v893_v46 = vsub.f32 %v888_v42, %v892_v45  ;;  %v894_v47 = vsub.f32 %v889_v43, %v892_v45 }
 0x356   :  { %v895_v48 = vmul.f32 1.442695, %v893_v46  ;;  %v897_v49 = vmul.f32 1.442695, %v894_v47 }
 0x358   :  { %961 = vpow2.f32 %v895_v48 }
 0x359   :  { %963 = vpow2.f32 %v897_v49 }
 0x35e   :  { %v962_v50 = vpop.eup %961 }
 0x35f   :  { %v964_v51 = vpop.eup %963 }
 0x360   :  { %v899_v52 = vadd.f32 %v964_v51, %v962_v50 }
 0x362   :  { %900 = vadd.xlane.f32.xlu0 %v899_v52 }
 0x3d5   :  { %v901_v53 = vpop.xlane.xlu0 %900 }
 0x3d6   :  { %965 = vlog2.f32 %v901_v53 }
 0x3dc   :  { %v966_v54 = vpop.eup %965 }
 0x3dd   :  { %v903_v55 = vmul.f32 0.6931472, %v966_v54 }
 0x3df   :  { %v904_v56 = vsub.f32 %v893_v46, %v903_v55  ;;  %v905_v57 = vsub.f32 %v894_v47, %v903_v55 }
 0x3e1   :  { %906 = vst [vmem:[#allocation11] sm:$0xff] %v904_v56 }
 0x3e2   :  { %907 = vst [vmem:[#allocation11 + $0x8] sm:$0xff] %v905_v57 }
 0x3e3   :  { %918 = dma.vmem_to_hbm [thread:$0]  %s914_s4, 256, %s916_s21, [#allocation4]  }
 0x3e4   :  { %1117 = dma.done.wait [#allocation4], 256  }
 0x3e5   :  { %1118 = vsyncadd [#allocation4], 4294967040 }
 0x3e6   :  { %923 = vsyncpa [#allocation3], 1 }
 0x3e7   :  { %924 = vsyncpa [#allocation6], 1 }
 0x3e8   :  { %925 = vsyncpa [#allocation9], 1 }
 0x3e9   :  { %926 = vsyncpa [#allocation4], 1 }

</bundles_post_ra>
